<compile_context>
chip_gen: v7x
topology: tpu7x:2x2x1
jax: 0.10.0
libtpu: 0.0.40
codegen_flags: <defaults>
</compile_context>

<pallas_src>
import jax
import jax.numpy as jnp
from jax.experimental import pallas as pl
from jax.experimental.pallas import tpu as pltpu

# ---------------- model hyper-params (consistent with FC.__init__) -----------
NUM_CLASSES = 10
WEIGHT_BITS = 2
ACT_BITS = 2
IN_BITS = 8
IN_CHANNELS = 1
IN_FEATURES_HW = (16, 16)           # reduce(mul, in_features) = 256
HIDDEN = (64, 64)                   # out_features list
BATCH = 8
BN_EPS = 1e-5
TN_EPS = 1e-4

IN_N = float(2 ** (IN_BITS - 1) - 1)      # 127.0 (8-bit narrow-range levels)
ACT_N = float(2 ** (ACT_BITS - 1) - 1)    # 1.0   (2-bit narrow-range levels)
LANE = 128
SUBLANE = 8
MAX_TILE = 1024                           # batch-tile cap (was 512)
SPLIT_THRESHOLD = 512                     # below this, never split the batch


def _cdiv(a, b):
    return -(-a // b)


def _round_up(a, b):
    return _cdiv(a, b) * b


def _quant_ref(x, bits):
    """CommonQuant (const scale 1, signed, narrow range) — reference form."""
    if bits == 1:
        return jnp.where(x >= 0, 1.0, -1.0).astype(x.dtype)
    n = float(2 ** (bits - 1) - 1)
    return jnp.clip(jnp.round(x * n), -n, n) / n


def _act_levels(x, n):
    """Activation quant emitting *integer levels*; the 1/n output scale is
    folded into the next layer's affine in the wrapper (exactly equivalent)."""
    if n == 1.0:
        return jnp.clip(jnp.round(x), -1.0, 1.0)
    return jnp.clip(jnp.round(x * n), -n, n)


# ------------------------------ Pallas kernel --------------------------------
def fc_kernel(x_ref, w1_ref, w2_ref, w3_ref, aff_ref, o_ref):
    # Input pre-scale + 8-bit input quant folded into one affine inside the
    # rounding:  round((2x-1)*127) == round(254x - 127).  Integer levels in
    # [-127, 127] are bf16-exact; the 1/127 scale is folded into the BN1 scale.
    x = x_ref[...].astype(jnp.float32)
    xq = jnp.clip(jnp.round(x * (2.0 * IN_N) - IN_N), -IN_N, IN_N)

    # packed per-feature affines: rows = [a1, b1, a2, b2]  (quant scales folded)
    aff = aff_ref[...]
    a1, b1 = aff[0:1, :], aff[1:2, :]
    a2, b2 = aff[2:3, :], aff[3:4, :]

    # hidden layer 1: bf16 MXU (exact integer operands) -> folded BN affine
    # (includes 1/127) -> 2-bit act quant (integer levels {-1,0,1})
    h = jnp.dot(xq.astype(jnp.bfloat16), w1_ref[...],
                preferred_element_type=jnp.float32)
    h = _act_levels(h * a1 + b1, ACT_N)

    # hidden layer 2
    h = jnp.dot(h.astype(jnp.bfloat16), w2_ref[...],
                preferred_element_type=jnp.float32)
    h = _act_levels(h * a2 + b2, ACT_N)

    # classifier: z is an exact small integer (|z| <= 64) -> lossless bf16 store.
    # TensorNorm (2 scalars) is applied in the wrapper on the sliced result.
    z = jnp.dot(h.astype(jnp.bfloat16), w3_ref[...],
                preferred_element_type=jnp.float32)
    o_ref[...] = z.astype(o_ref.dtype)


# ------------------------------ batch-tile policy -----------------------------
def _choose_batch_tile(b):
    """Sublane-aligned batch tiling.

    * bp <= 512: a single grid step (splitting tiny batches only adds fixed
      per-step overhead on single-TC v5e/v6e and shrinks the M fed to the MXU).
    * bp  > 512: tiles of up to MAX_TILE rows with an EVEN step count so the
      grid shards evenly across v7x's two TensorCores ("parallel" semantics).
    """
    bp = _round_up(max(b, SUBLANE), SUBLANE)
    if bp <= SPLIT_THRESHOLD:
        return bp, bp                          # grid = (1,)
    steps = _cdiv(bp, MAX_TILE)
    if steps % 2:
        steps += 1                             # even step count for megacore
    tb = _round_up(_cdiv(bp, steps), SUBLANE)
    bp = tb * steps
    return tb, bp


# ------------------------------ wrapper ---------------------------------------
@jax.jit
def fc_forward(x_nchw, params):
    b = x_nchw.shape[0]
    f0 = 1
    for s in x_nchw.shape[1:]:
        f0 *= s
    x2d = x_nchw.reshape(b, f0)                      # torch .view(B, -1)

    w1, w2, w3 = params["w1"], params["w2"], params["w3"]
    aff = params["aff"]
    tn = params["tn"]                                # (scale, shift) scalars

    f0p, hp = w1.shape
    ncp = w3.shape[1]

    # pad flattened feature dim if needed (no-op here: 256 already lane-aligned)
    if f0p != f0:
        x2d = jnp.pad(x2d, ((0, 0), (0, f0p - f0)))

    # batch tiling (pad rows; padded rows are sliced off below)
    tb, bp = _choose_batch_tile(b)
    if bp != b:
        x2d = jnp.pad(x2d, ((0, bp - b), (0, 0)))
    grid = (bp // tb,)

    flops = 2 * bp * (f0p * hp + hp * hp + hp * ncp)
    bytes_accessed = (bp * f0p * 4                          # x (f32)
                      + (w1.size + w2.size + w3.size) * 2   # bf16 weights
                      + aff.size * 4                        # packed affines
                      + bp * ncp * 2)                       # bf16 output

    z = pl.pallas_call(
        fc_kernel,
        out_shape=jax.ShapeDtypeStruct((bp, ncp), jnp.bfloat16),
        grid=grid,
        in_specs=[
            pl.BlockSpec((tb, f0p), lambda i: (i, 0)),      # x tile
            pl.BlockSpec((f0p, hp), lambda i: (0, 0)),      # W1 (bf16, resident)
            pl.BlockSpec((hp, hp), lambda i: (0, 0)),       # W2 (bf16, resident)
            pl.BlockSpec((hp, ncp), lambda i: (0, 0)),      # W3 (bf16, resident)
            pl.BlockSpec((4, hp), lambda i: (0, 0)),        # packed [a1,b1,a2,b2]
        ],
        out_specs=pl.BlockSpec((tb, ncp), lambda i: (i, 0)),  # lane-dense (128)
        compiler_params=pltpu.CompilerParams(
            dimension_semantics=("parallel",),
            vmem_limit_bytes=32 * 1024 * 1024),
        cost_estimate=pl.CostEstimate(
            flops=flops, transcendentals=0, bytes_accessed=bytes_accessed),
    )(x2d, w1, w2, w3, aff)

    # TensorNorm (eval) folded to two scalars, applied on the real (b, 10) slab.
    # z is an exact integer in bf16, so this is bit-equivalent to in-kernel f32.
    out = z[:b, :NUM_CLASSES].astype(jnp.float32) * tn[0] + tn[1]
    return out


# ------------------------------ param init ------------------------------------
def init_params(key):
    f0 = IN_CHANNELS * IN_FEATURES_HW[0] * IN_FEATURES_HW[1]
    dims = [f0, HIDDEN[0], HIDDEN[1], NUM_CLASSES]
    keys = jax.random.split(key, 13)

    # QuantLinear weights: torch shape (out, in), uniform(-1, 1); quantize with
    # CommonWeightQuant (scale 1, narrow range -> levels {-1,0,1}) and transpose
    # to (in, out).
    w1 = _quant_ref(jax.random.uniform(keys[0], (dims[1], dims[0]), jnp.float32, -1., 1.),
                    WEIGHT_BITS).T
    w2 = _quant_ref(jax.random.uniform(keys[1], (dims[2], dims[1]), jnp.float32, -1., 1.),
                    WEIGHT_BITS).T
    w3 = _quant_ref(jax.random.uniform(keys[2], (dims[3], dims[2]), jnp.float32, -1., 1.),
                    WEIGHT_BITS).T

    def bn_fold(kg, kb, km, kv, n):
        gamma = jax.random.uniform(kg, (n,), jnp.float32, 0.5, 1.5)
        beta = jax.random.uniform(kb, (n,), jnp.float32, -0.5, 0.5)
        rmean = jax.random.uniform(km, (n,), jnp.float32, -0.5, 0.5)
        rvar = jax.random.uniform(kv, (n,), jnp.float32, 0.5, 1.5)
        a = gamma / jnp.sqrt(rvar + BN_EPS)
        b = beta - rmean * a
        return a, b

    a1, b1 = bn_fold(keys[3], keys[4], keys[5], keys[6], dims[1])
    a2, b2 = bn_fold(keys[7], keys[8], keys[9], keys[10], dims[2])

    # TensorNorm: weight, bias ~ rand(1); running_mean=0, running_var=1 (eval)
    tn_w = jax.random.uniform(keys[11], (), jnp.float32, 0.0, 1.0)
    tn_b = jax.random.uniform(keys[12], (), jnp.float32, 0.0, 1.0)
    tn_rm = jnp.float32(0.0)
    tn_rv = jnp.float32(1.0)

    # ---- reference-side params (original module formulation) ----------------
    ref = dict(w1=w1, w2=w2, w3=w3,
               a1=a1.reshape(1, -1), b1=b1.reshape(1, -1),
               a2=a2.reshape(1, -1), b2=b2.reshape(1, -1),
               tn=(tn_rm, tn_rv, tn_w, tn_b))

    # ---- kernel-side params: folded scales, lane-padded, bf16 weights -------
    f0p = _round_up(dims[0], LANE)
    hp = _round_up(max(dims[1], dims[2]), LANE)     # common padded hidden width
    ncp = _round_up(dims[3], LANE)

    def pad2(w, rows, cols):
        return jnp.pad(w, ((0, rows - w.shape[0]), (0, cols - w.shape[1])))

    # weight levels are {-1,0,1}: exactly representable in bf16
    kw1 = pad2(w1, f0p, hp).astype(jnp.bfloat16)
    kw2 = pad2(w2, hp, hp).astype(jnp.bfloat16)
    kw3 = pad2(w3, hp, ncp).astype(jnp.bfloat16)

    # fold the 1/127 input-quant scale into BN1 scale; the 1/ACT_N act-quant
    # scale folds into BN2 scale and the TensorNorm scale (ACT_N == 1 here).
    # Pack all four affine vectors into one (4, hp) VMEM input:
    #   row 0: a1/IN_N   row 1: b1   row 2: a2/ACT_N   row 3: b2
    ka1 = jnp.pad(a1 / IN_N, (0, hp - dims[1]))
    kb1 = jnp.pad(b1, (0, hp - dims[1]))
    ka2 = jnp.pad(a2 / ACT_N, (0, hp - dims[2]))
    kb2 = jnp.pad(b2, (0, hp - dims[2]))
    kaff = jnp.stack([ka1, kb1, ka2, kb2]).astype(jnp.float32)   # (4, hp)

    # TensorNorm (eval) folded: out = z * s3 + sh3 (applied in the wrapper)
    inv_std = jax.lax.rsqrt(tn_rv + TN_EPS)
    s3 = (tn_w * inv_std) / ACT_N
    sh3 = tn_b - tn_rm * (tn_w * inv_std)
    ktn = jnp.stack([s3, sh3]).astype(jnp.float32)               # (2,) scalars

    kernel_params = dict(w1=kw1, w2=kw2, w3=kw3, aff=kaff, tn=ktn)
    return kernel_params, ref


# ------------------------------ pure-JAX reference ----------------------------
def fc_reference(x_nchw, r):
    """Pure-JAX reference (inference semantics). The 1/127 input-quant scale is
    folded into the BN1 scale — algebraically identical to the module
    ((q/127) @ W * a == (q @ W) * (a/127)) — which keeps every matmul exact
    integer-valued so the comparison tolerance can stay tight."""
    b = x_nchw.shape[0]
    x = x_nchw.reshape(b, -1)
    x = 2.0 * x - 1.0
    xq = jnp.clip(jnp.round(x * IN_N), -IN_N, IN_N)
    h = _quant_ref((xq @ r["w1"]) * (r["a1"] / IN_N) + r["b1"], ACT_BITS)
    h = _quant_ref((h @ r["w2"]) * r["a2"] + r["b2"], ACT_BITS)
    z = h @ r["w3"]
    rm, rv, tw, tb = r["tn"]
    return (z - rm) / jnp.sqrt(rv + TN_EPS) * tw + tb


if __name__ == "__main__":
    key = jax.random.PRNGKey(0)
    kx, kp = jax.random.split(key)
    x = jax.random.uniform(
        kx, (BATCH, IN_CHANNELS, IN_FEATURES_HW[0], IN_FEATURES_HW[1]),
        jnp.float32, 0.0, 1.0)
    kernel_params, ref_params = init_params(kp)

    out = jax.block_until_ready(fc_forward(x, kernel_params))
    ref = fc_reference(x, ref_params)

    assert out.shape == (BATCH, NUM_CLASSES), out.shape
    max_err = float(jnp.max(jnp.abs(out - ref)))
    assert jnp.allclose(out, ref, atol=2e-4, rtol=2e-4), f"mismatch: {max_err}"
    print("KERNEL_OK")
</pallas_src>

<mosaic_0001>
module attributes {stable_mosaic.version = 11 : i64} {
  func.func @fc_kernel(%arg0: i32, %arg1: memref<8x256xf32, #tpu.memory_space<vmem>>, %arg2: memref<256x128xbf16, #tpu.memory_space<vmem>>, %arg3: memref<128x128xbf16, #tpu.memory_space<vmem>>, %arg4: memref<128x128xbf16, #tpu.memory_space<vmem>>, %arg5: memref<4x128xf32, #tpu.memory_space<vmem>>, %arg6: memref<8x128xbf16, #tpu.memory_space<vmem>>) attributes {dimension_semantics = [#tpu.dimension_semantics<parallel>], iteration_bounds = array<i64: 1>, scalar_prefetch = 0 : i64, scratch_operands = 0 : i64, tpu.core_type = #tpu.core_type<tc>, window_params = [{transform_indices = @transform_0, window_bounds = array<i64: 8, 256>}, {pipeline_mode = #tpu.pipeline_mode<synchronous>, transform_indices = @transform_1, window_bounds = array<i64: 256, 128>}, {pipeline_mode = #tpu.pipeline_mode<synchronous>, transform_indices = @transform_2, window_bounds = array<i64: 128, 128>}, {pipeline_mode = #tpu.pipeline_mode<synchronous>, transform_indices = @transform_3, window_bounds = array<i64: 128, 128>}, {pipeline_mode = #tpu.pipeline_mode<synchronous>, transform_indices = @transform_4, window_bounds = array<i64: 4, 128>}, {transform_indices = @transform_5, window_bounds = array<i64: 8, 128>}]} {
    %c0 = arith.constant 0 : index
    %c0_0 = arith.constant 0 : index
    %0 = vector.load %arg1[%c0, %c0_0] : memref<8x256xf32, #tpu.memory_space<vmem>>, vector<8x256xf32>
    %cst = arith.constant 2.540000e+02 : f32
    %1 = vector.broadcast %cst : f32 to vector<8x256xf32>
    %2 = arith.mulf %0, %1 : vector<8x256xf32>
    %cst_1 = arith.constant 1.270000e+02 : f32
    %3 = vector.broadcast %cst_1 : f32 to vector<8x256xf32>
    %4 = arith.subf %2, %3 : vector<8x256xf32>
    %5 = math.roundeven %4 : vector<8x256xf32>
    %cst_2 = arith.constant -1.270000e+02 : f32
    %cst_3 = arith.constant 1.270000e+02 : f32
    %6 = vector.broadcast %cst_2 : f32 to vector<8x256xf32>
    %7 = arith.maximumf %6, %5 : vector<8x256xf32>
    %8 = vector.broadcast %cst_3 : f32 to vector<8x256xf32>
    %9 = arith.minimumf %8, %7 : vector<8x256xf32>
    %c0_4 = arith.constant 0 : index
    %c0_5 = arith.constant 0 : index
    %10 = vector.load %arg5[%c0_4, %c0_5] : memref<4x128xf32, #tpu.memory_space<vmem>>, vector<4x128xf32>
    %11 = vector.extract_strided_slice %10 {offsets = [0, 0], sizes = [1, 128], strides = [1, 1]} : vector<4x128xf32> to vector<1x128xf32>
    %12 = vector.extract_strided_slice %10 {offsets = [1, 0], sizes = [1, 128], strides = [1, 1]} : vector<4x128xf32> to vector<1x128xf32>
    %13 = vector.extract_strided_slice %10 {offsets = [2, 0], sizes = [1, 128], strides = [1, 1]} : vector<4x128xf32> to vector<1x128xf32>
    %14 = vector.extract_strided_slice %10 {offsets = [3, 0], sizes = [1, 128], strides = [1, 1]} : vector<4x128xf32> to vector<1x128xf32>
    %15 = arith.truncf %9 : vector<8x256xf32> to vector<8x256xbf16>
    %c0_6 = arith.constant 0 : index
    %c0_7 = arith.constant 0 : index
    %16 = vector.load %arg2[%c0_6, %c0_7] : memref<256x128xbf16, #tpu.memory_space<vmem>>, vector<256x128xbf16>
    %cst_8 = arith.constant dense<0.000000e+00> : vector<8x128xf32>
    %17 = tpu.matmul %15, %16, %cst_8 {dimension_numbers = #tpu.dot_dimension_numbers<[1], [0], [0], [1], [0, 0, 1, 1], [], []>} : vector<8x256xbf16>, vector<256x128xbf16>, vector<8x128xf32> -> vector<8x128xf32>
    %18 = vector.broadcast %11 : vector<1x128xf32> to vector<8x128xf32>
    %19 = arith.mulf %17, %18 : vector<8x128xf32>
    %20 = vector.broadcast %12 : vector<1x128xf32> to vector<8x128xf32>
    %21 = arith.addf %19, %20 : vector<8x128xf32>
    %22 = math.roundeven %21 : vector<8x128xf32>
    %cst_9 = arith.constant -1.000000e+00 : f32
    %cst_10 = arith.constant 1.000000e+00 : f32
    %23 = vector.broadcast %cst_9 : f32 to vector<8x128xf32>
    %24 = arith.maximumf %23, %22 : vector<8x128xf32>
    %25 = vector.broadcast %cst_10 : f32 to vector<8x128xf32>
    %26 = arith.minimumf %25, %24 : vector<8x128xf32>
    %27 = arith.truncf %26 : vector<8x128xf32> to vector<8x128xbf16>
    %c0_11 = arith.constant 0 : index
    %c0_12 = arith.constant 0 : index
    %28 = vector.load %arg3[%c0_11, %c0_12] : memref<128x128xbf16, #tpu.memory_space<vmem>>, vector<128x128xbf16>
    %cst_13 = arith.constant dense<0.000000e+00> : vector<8x128xf32>
    %29 = tpu.matmul %27, %28, %cst_13 {dimension_numbers = #tpu.dot_dimension_numbers<[1], [0], [0], [1], [0, 0, 1, 1], [], []>} : vector<8x128xbf16>, vector<128x128xbf16>, vector<8x128xf32> -> vector<8x128xf32>
    %30 = vector.broadcast %13 : vector<1x128xf32> to vector<8x128xf32>
    %31 = arith.mulf %29, %30 : vector<8x128xf32>
    %32 = vector.broadcast %14 : vector<1x128xf32> to vector<8x128xf32>
    %33 = arith.addf %31, %32 : vector<8x128xf32>
    %34 = math.roundeven %33 : vector<8x128xf32>
    %cst_14 = arith.constant -1.000000e+00 : f32
    %cst_15 = arith.constant 1.000000e+00 : f32
    %35 = vector.broadcast %cst_14 : f32 to vector<8x128xf32>
    %36 = arith.maximumf %35, %34 : vector<8x128xf32>
    %37 = vector.broadcast %cst_15 : f32 to vector<8x128xf32>
    %38 = arith.minimumf %37, %36 : vector<8x128xf32>
    %39 = arith.truncf %38 : vector<8x128xf32> to vector<8x128xbf16>
    %c0_16 = arith.constant 0 : index
    %c0_17 = arith.constant 0 : index
    %40 = vector.load %arg4[%c0_16, %c0_17] : memref<128x128xbf16, #tpu.memory_space<vmem>>, vector<128x128xbf16>
    %cst_18 = arith.constant dense<0.000000e+00> : vector<8x128xf32>
    %41 = tpu.matmul %39, %40, %cst_18 {dimension_numbers = #tpu.dot_dimension_numbers<[1], [0], [0], [1], [0, 0, 1, 1], [], []>} : vector<8x128xbf16>, vector<128x128xbf16>, vector<8x128xf32> -> vector<8x128xf32>
    %42 = arith.truncf %41 : vector<8x128xf32> to vector<8x128xbf16>
    %c0_19 = arith.constant 0 : index
    %c0_20 = arith.constant 0 : index
    %43 = vector.load %arg6[%c0_19, %c0_20] : memref<8x128xbf16, #tpu.memory_space<vmem>>, vector<8x128xbf16>
    tpu.vector_store %arg6[%c0_19, %c0_20], %42 {strides = array<i32>} : memref<8x128xbf16, #tpu.memory_space<vmem>>, vector<8x128xbf16>,
    return
  }
  func.func @transform_0(%arg0: i32) -> (i32, i32) {
    %c0_i32 = arith.constant 0 : i32
    %c0_i32_0 = arith.constant 0 : i32
    return %arg0, %c0_i32 : i32, i32
  }
  func.func @transform_1(%arg0: i32) -> (i32, i32) {
    %c0_i32 = arith.constant 0 : i32
    %c0_i32_0 = arith.constant 0 : i32
    %c0_i32_1 = arith.constant 0 : i32
    return %c0_i32, %c0_i32_0 : i32, i32
  }
  func.func @transform_2(%arg0: i32) -> (i32, i32) {
    %c0_i32 = arith.constant 0 : i32
    %c0_i32_0 = arith.constant 0 : i32
    %c0_i32_1 = arith.constant 0 : i32
    return %c0_i32, %c0_i32_0 : i32, i32
  }
  func.func @transform_3(%arg0: i32) -> (i32, i32) {
    %c0_i32 = arith.constant 0 : i32
    %c0_i32_0 = arith.constant 0 : i32
    %c0_i32_1 = arith.constant 0 : i32
    return %c0_i32, %c0_i32_0 : i32, i32
  }
  func.func @transform_4(%arg0: i32) -> (i32, i32) {
    %c0_i32 = arith.constant 0 : i32
    %c0_i32_0 = arith.constant 0 : i32
    %c0_i32_1 = arith.constant 0 : i32
    return %c0_i32, %c0_i32_0 : i32, i32
  }
  func.func @transform_5(%arg0: i32) -> (i32, i32) {
    %c0_i32 = arith.constant 0 : i32
    %c0_i32_0 = arith.constant 0 : i32
    return %arg0, %c0_i32 : i32, i32
  }
}

</mosaic_0001>

<bundles_post_ra>
// kernel: fc_forward.1
= control target key start
LH: loop header
LB: loop body
LE: loop exit
PB: predicated region body
PF: predicated region fallthrough
CT: control target
= control target key end

     0   :  { %10 = vsyncpa [#allocation3], 0  ;;  %s822_s0 = inlined_call_operand.vmem [shape: f32[8,256], index: 0, kind: input, shape index: {}]   ;;  %s823_s1 = inlined_call_operand.vmem [shape: bf16[256,128], index: 1, kind: input, shape index: {}]   ;;  %s824_s2 = inlined_call_operand.hbm [shape: bf16[128,128], index: 2, kind: input, shape index: {}]   ;;  %s825_s3 = inlined_call_operand.hbm [shape: bf16[128,128], index: 3, kind: input, shape index: {}]   ;;  %s826_s4 = inlined_call_operand.vmem [shape: f32[4,128], index: 4, kind: input, shape index: {}]   ;;  %s827_s5 = inlined_call_operand.vmem [shape: bf16[8,128], index: 5, kind: output, shape index: {}]  }
   0x1   :  { %11 = vsyncpa [#allocation5], 0  ;;  %s684_s18 = smov [#allocation2]   ;;  %s636_s22 = scalar_lea.hbm %s824_s2, 1024 }
   0x2   :  { %s21_s19 = sshll.u32 %s684_s18, 4  ;;  %p637_p0 = scmp.ne.s32.totalorder %s824_s2, %s636_s22  ;;  %s22_s19 = int_to_ptr.vmem [resolvable:$true] %s21_s19 }
   0x3   :  { %p640_p1 = scmp.lt.u32.totalorder %s636_s22, %s824_s2 }
   0x5   :  { %p642_p2 = pnand %p640_p1, %p637_p0 }
   0x7   :  { %645 = shalt.err (!%p642_p2)
}
   0x8   :  { %s646_s27 = scalar_lea.vmem %s22_s19, 1024  ;;  %p651_p4 = scmp.lt.s32.totalorder %s22_s19, %s22_s19 }
   0x9   :  { %p647_p3 = scmp.ne.s32.totalorder %s22_s19, %s646_s27  ;;  %p652_p5 = scmp.lt.s32.totalorder %s646_s27, %s646_s27 }
   0xb   :  { %p653_p6 = por %p652_p5, %p651_p4 }
   0xd   :  { %p654_p7 = pnand %p653_p6, %p647_p3 }
   0xf   :  { %657 = shalt.err (!%p654_p7)
}
  0x10   :  { %s685_s28 = smov 64   ;;  %s686_s29 = smov 4  }
  0x11   :  { %27 = dma.hbm_to_vmem [thread:$0]  %s824_s2, 1024, %s22_s19, [#allocation3], %s685_s28, %s685_s28, %s686_s29  }
  0x12   :  { %s687_s7 = smov [#allocation4]   ;;  %s658_s11 = scalar_lea.hbm %s825_s3, 1024 }
  0x13   :  { %s33_s8 = sshll.u32 %s687_s7, 4  ;;  %p659_p8 = scmp.ne.s32.totalorder %s825_s3, %s658_s11  ;;  %s34_s8 = int_to_ptr.vmem [resolvable:$true] %s33_s8 }
  0x14   :  { %p662_p9 = scmp.lt.u32.totalorder %s658_s11, %s825_s3 }
  0x16   :  { %p664_p10 = pnand %p662_p9, %p659_p8 }
  0x18   :  { %667 = shalt.err (!%p664_p10)
}
  0x19   :  { %s668_s16 = scalar_lea.vmem %s34_s8, 1024  ;;  %p673_p12 = scmp.lt.s32.totalorder %s34_s8, %s34_s8 }
  0x1a   :  { %p669_p11 = scmp.ne.s32.totalorder %s34_s8, %s668_s16  ;;  %p674_p13 = scmp.lt.s32.totalorder %s668_s16, %s668_s16 }
  0x1c   :  { %p675_p0 = por %p674_p13, %p673_p12 }
  0x1e   :  { %p676_p1 = pnand %p675_p0, %p669_p11 }
  0x20   :  { %679 = shalt.err (!%p676_p1)
}
  0x21   :  { %39 = dma.hbm_to_vmem [thread:$0]  %s825_s3, 1024, %s34_s8, [#allocation5], %s685_s28, %s685_s28, %s686_s29  }
  0x22   :  { %680 = dma.done.wait [#allocation3], 1024  }
  0x23   :  { %681 = vsyncadd [#allocation3], 4294966272 }
  0x24   :  { %682 = dma.done.wait [#allocation5], 1024  }
  0x25   :  { %683 = vsyncadd [#allocation5], 4294966272  ;;  %v688_v0 = vmov 0.0   ;;  %v604_v1 = vld [vmem:[%s823_s1 + $0x40] sm:$0xff]   ;;  %v606_v3 = vld [vmem:[%s823_s1 + $0x48] sm:$0xff]   ;;  %vm689_vm0 = vmmov 0   ;;  %v232_v42 = vlaneseq }
  0x26   :  { %554 = vmatprep.subr.bf16.mxu1 %v688_v0  ;;  %v605_v2 = vld [vmem:[%s823_s1] sm:$0xff]   ;;  %514 = vmatprep.subr.bf16.mxu0 %v604_v1  ;;  %v607_v4 = vld [vmem:[%s823_s1 + $0x8] sm:$0xff]   ;;  %v608_v5 = vld [vmem:[%s823_s1 + $0x50] sm:$0xff]  }
  0x27   :  { %515 = vmatpush3.bf16.msra.mxu0 %v605_v2  ;;  %v609_v6 = vld [vmem:[%s823_s1 + $0x10] sm:$0xff]   ;;  %v610_v7 = vld [vmem:[%s823_s1 + $0x58] sm:$0xff]   ;;  %v612_v9 = vld [vmem:[%s823_s1 + $0x60] sm:$0xff]   ;;  %570 = vmatprep.mubr.msk.bf16.mxu1 %vm689_vm0, %v688_v0  ;;  %v233_v43 = vshrl.u32 %v232_v42, 7 }
  0x28   :  { %516 = vmatprep.subr.bf16.mxu0 %v606_v3  ;;  %v611_v8 = vld [vmem:[%s823_s1 + $0x18] sm:$0xff]   ;;  %v613_v10 = vld [vmem:[%s823_s1 + $0x20] sm:$0xff]   ;;  %v614_v11 = vld [vmem:[%s823_s1 + $0x68] sm:$0xff]  }
  0x29   :  { %v50_v12 = vld [vmem:[%s822_s0 + $0x8] sm:$0xff]  ;;  %v49_v13 = vld [vmem:[%s822_s0] sm:$0xff]  ;;  %v616_v18 = vld [vmem:[%s823_s1 + $0x70] sm:$0xff]   ;;  %v234_v44 = vsub.s32 0, %v233_v43  ;;  %v239_v46 = vsub.s32 1, %v233_v43  ;;  %v352_v62 = vsub.s32 2, %v233_v43 }
  0x2a   :  { %v615_v14 = vld [vmem:[%s823_s1 + $0x28] sm:$0xff]   ;;  %v52_v15 = vmul.f32 254.0, %v50_v12  ;;  %v51_v16 = vmul.f32 254.0, %v49_v13  ;;  %v620_v17 = vld [vmem:[#allocation2] sm:$0xff]   ;;  %v617_v22 = vld [vmem:[%s823_s1 + $0x30] sm:$0xff]   ;;  %v357_v63 = vsub.s32 3, %v233_v43 }
  0x2b   :  { %517 = vmatpush3.bf16.msra.mxu0 %v607_v4  ;;  %555 = vmatpush3.bf16.msra.mxu1 %v620_v17  ;;  %v621_v21 = vld [vmem:[#allocation2 + $0x8] sm:$0xff]   ;;  %v618_v25 = vld [vmem:[%s823_s1 + $0x78] sm:$0xff]   ;;  %v622_v26 = vld [vmem:[#allocation2 + $0x10] sm:$0xff]  }
  0x2c   :  { %518 = vmatprep.subr.bf16.mxu0 %v608_v5  ;;  %v477_v19 = vadd.f32 -127.0, %v52_v15  ;;  %v476_v20 = vadd.f32 -127.0, %v51_v16  ;;  %556 = vmatprep.subr.bf16.mxu1 %v688_v0  ;;  %v619_v29 = vld [vmem:[%s823_s1 + $0x38] sm:$0xff]   ;;  %v624_v33 = vld [vmem:[#allocation2 + $0x20] sm:$0xff]   ;;  %v625_v34 = vld [vmem:[#allocation2 + $0x28] sm:$0xff]  }
  0x2d   :  { %v623_v31 = vld [vmem:[#allocation2 + $0x18] sm:$0xff]   ;;  %v626_v35 = vld [vmem:[#allocation2 + $0x30] sm:$0xff]   ;;  %v628_v37 = vld [vmem:[#allocation4] sm:$0xff]  }
  0x2e   :  { %v595_v23 = vround.rtne.f32 %v477_v19  ;;  %v594_v24 = vround.rtne.f32 %v476_v20  ;;  %v627_v36 = vld [vmem:[#allocation2 + $0x38] sm:$0xff]   ;;  %v629_v38 = vld [vmem:[#allocation4 + $0x8] sm:$0xff]   ;;  %v630_v39 = vld [vmem:[#allocation4 + $0x10] sm:$0xff]  }
  0x2f   :  { %519 = vmatpush3.bf16.msra.mxu0 %v609_v6  ;;  %557 = vmatpush3.bf16.msra.mxu1 %v621_v21  ;;  %v631_v40 = vld [vmem:[#allocation4 + $0x18] sm:$0xff]   ;;  %v632_v41 = vld [vmem:[#allocation4 + $0x20] sm:$0xff]   ;;  %v633_v59 = vld [vmem:[#allocation4 + $0x28] sm:$0xff]  }
  0x30   :  { %520 = vmatprep.subr.bf16.mxu0 %v610_v7  ;;  %v479_v27 = vclamps-f32 %v595_v23, 127.0  ;;  %v478_v28 = vclamps-f32 %v594_v24, 127.0  ;;  %558 = vmatprep.subr.bf16.mxu1 %v688_v0  ;;  %v61_v45 = vld [vmem:[%s826_s4] sm:$0xf]  ;;  %v634_v60 = vld [vmem:[#allocation4 + $0x30] sm:$0xff]   ;;  %v635_v61 = vld [vmem:[#allocation4 + $0x38] sm:$0xff]  }
  0x31   :  { %v235_v48 = vrot.slane %v61_v45, %v234_v44  ;;  %v240_v51 = vrot.slane %v61_v45, %v239_v46  ;;  %v353_v1 = vrot.slane %v61_v45, %v352_v62  ;;  %v358_v2 = vrot.slane %v61_v45, %v357_v63 }
  0x32   :  { %v63_v30 = vpack.c.bf16 %v479_v27, %v479_v27  ;;  %v62_v32 = vpack.c.bf16 %v478_v28, %v478_v28 }
  0x33   :  { %521 = vmatpush3.bf16.msra.mxu0 %v611_v8  ;;  %559 = vmatpush3.bf16.msra.mxu1 %v622_v26 }
  0x34   :  { %522 = vmatprep.subr.bf16.mxu0 %v612_v9  ;;  %224 = vmatprep.mubr.bf16.mxu0 %v63_v30 }
  0x35   :  { %560 = vmatprep.subr.bf16.mxu1 %v688_v0 }
  0x37   :  { %523 = vmatpush3.bf16.msra.mxu0 %v613_v10  ;;  %561 = vmatpush3.bf16.msra.mxu1 %v623_v31 }
  0x38   :  { %524 = vmatprep.subr.bf16.mxu0 %v614_v11  ;;  %562 = vmatprep.subr.bf16.mxu1 %v688_v0 }
  0x3b   :  { %525 = vmatpush3.bf16.msra.mxu0 %v615_v14  ;;  %563 = vmatpush3.bf16.msra.mxu1 %v624_v33 }
  0x3c   :  { %526 = vmatprep.subr.bf16.mxu0 %v616_v18  ;;  %564 = vmatprep.subr.bf16.mxu1 %v688_v0 }
  0x3f   :  { %527 = vmatpush3.bf16.msra.mxu0 %v617_v22  ;;  %565 = vmatpush3.bf16.msra.mxu1 %v625_v34 }
  0x40   :  { %528 = vmatprep.subr.bf16.mxu0 %v618_v25  ;;  %566 = vmatprep.subr.bf16.mxu1 %v688_v0 }
  0x43   :  { %529 = vmatpush3.bf16.msra.mxu0 %v619_v29  ;;  %567 = vmatpush3.bf16.msra.mxu1 %v626_v35 }
  0x44   :  { %574 = vmatprep.subr.bf16.mxu0 %v688_v0  ;;  %568 = vmatprep.subr.bf16.mxu1 %v688_v0 }
  0x46   :  { %225 = vmatmul.mubr.bf16.vlgmr.msra.gmra.mrb[0].mxu0 %v62_v32 }
  0x47   :  { %590 = vmatprep.mubr.msk.bf16.mxu0 %vm689_vm0, %v688_v0  ;;  %569 = vmatpush3.bf16.msra.mxu1 %v627_v36 }
  0x48   :  { %575 = vmatpush3.bf16.msra.mxu0 %v628_v37 }
  0x49   :  { %576 = vmatprep.subr.bf16.mxu0 %v688_v0 }
  0x4c   :  { %577 = vmatpush3.bf16.msra.mxu0 %v629_v38 }
  0x4d   :  { %578 = vmatprep.subr.bf16.mxu0 %v688_v0 }
  0x50   :  { %579 = vmatpush3.bf16.msra.mxu0 %v630_v39 }
  0x51   :  { %580 = vmatprep.subr.bf16.mxu0 %v688_v0 }
  0x54   :  { %581 = vmatpush3.bf16.msra.mxu0 %v631_v40 }
  0x55   :  { %582 = vmatprep.subr.bf16.mxu0 %v688_v0 }
  0x58   :  { %583 = vmatpush3.bf16.msra.mxu0 %v632_v41 }
  0x59   :  { %584 = vmatprep.subr.bf16.mxu0 %v688_v0 }
  0x5c   :  { %585 = vmatpush3.bf16.msra.mxu0 %v633_v59 }
  0x5d   :  { %586 = vmatprep.subr.bf16.mxu0 %v688_v0 }
  0x60   :  { %587 = vmatpush3.bf16.msra.mxu0 %v634_v60 }
  0x61   :  { %588 = vmatprep.subr.bf16.mxu0 %v688_v0 }
  0x64   :  { %589 = vmatpush3.bf16.msra.mxu0 %v635_v61 }
 0x119   :  { %v530_v47 = vpop.f32.mrb[0].mxu0 }
 0x11a   :  { %v531_v49 = vpop.f32.mrb[1].mxu0 }
 0x11b   :  { %v532_v50 = vadd.f32 %v531_v49, %v530_v47  ;;  %v533_v52 = vpop.f32.mrb[2].mxu0 }
 0x11c   :  { %v534_v53 = vpop.f32.mrb[3].mxu0 }
 0x11d   :  { %v236_v54 = vmul.f32 %v532_v50, %v235_v48 }
 0x11f   :  { %v241_v55 = vadd.f32 %v240_v51, %v236_v54 }
 0x121   :  { %v596_v56 = vround.rtne.f32 %v241_v55 }
 0x123   :  { %v496_v57 = vclamps-f32 %v596_v56, 1.0 }
 0x125   :  { %v245_v58 = vpack.c.bf16 %v496_v57, %v496_v57 }
 0x127   :  { %571 = vmatmul.mubr.bf16.vlgmr.msra.gmra.mrb[0].mxu1 %v245_v58 }
 0x1fa   :  { %v344_v3 = vpop.f32.mrb[0].mxu1 }
 0x1fb   :  { %v354_v4 = vmul.f32 %v353_v1, %v344_v3  ;;  %v572_v5 = vpop.f32.mrb[1].mxu1 }
 0x1fc   :  { %v347_v6 = vpop.f32.mrb[2].mxu1 }
 0x1fd   :  { %v359_v7 = vadd.f32 %v358_v2, %v354_v4  ;;  %v573_v8 = vpop.f32.mrb[3].mxu1 }
 0x1ff   :  { %v597_v9 = vround.rtne.f32 %v359_v7 }
 0x201   :  { %v505_v10 = vclamps-f32 %v597_v9, 1.0 }
 0x203   :  { %v363_v11 = vpack.c.bf16 %v505_v10, %v505_v10 }
 0x205   :  { %591 = vmatmul.mubr.bf16.vlgmr.msra.gmra.mrb[4].mxu0 %v363_v11 }
 0x2d8   :  { %v462_v12 = vpop.f32.mrb[4].mxu0 }
 0x2d9   :  { %v468_v13 = vpack.c.bf16 %v462_v12, %v462_v12  ;;  %v592_v14 = vpop.f32.mrb[5].mxu0 }
 0x2da   :  { %v465_v0 = vpop.f32.mrb[6].mxu0 }
 0x2db   :  { %469 = vst [vmem:[%s827_s5] sm:$0xf] %v468_v13  ;;  %v593_v15 = vpop.f32.mrb[7].mxu0 }
 0x2dc   :  { %474 = vsyncpa [#allocation3], 1 }
 0x2dd   :  { %475 = vsyncpa [#allocation5], 1 }

</bundles_post_ra>
